<compile_context>
chip_gen: v6e
topology: v6e:2x2x1
jax: 0.10.0
libtpu: 0.0.40
codegen_flags: <defaults>
</compile_context>

<pallas_src>
import jax
import jax.numpy as jnp
from jax.experimental import pallas as pl
from jax.experimental.pallas import tpu as pltpu

_SQRT_2_OVER_PI = 0.7978845608028654  # sqrt(2 / pi)


def _gelu_kernel(x_ref, o_ref):
    # x_ref / o_ref: (block_rows, cols) lane-dense tiles.
    x = x_ref[...].astype(jnp.float32)
    x2 = x * x
    inner = _SQRT_2_OVER_PI * x * (1.0 + 0.044715 * x2)
    t = jnp.tanh(inner)
    o_ref[...] = (x * (0.5 + 0.5 * t)).astype(o_ref.dtype)


def gelu(x, *, block_bytes=2 * 1024 * 1024):
    """Elementwise tanh-GELU of x (any shape, any float dtype)."""
    orig_shape = x.shape
    orig_dtype = x.dtype
    itemsize = jnp.dtype(orig_dtype).itemsize
    n = x.size

    # ---- Lane-dense 2-D view; avoid pad / slice copies whenever possible ----
    n_valid = None  # set only when the (rare) pad path is taken
    if (x.ndim >= 2 and orig_shape[-1] % 128 == 0
            and orig_shape[-1] * itemsize * 8 <= block_bytes):
        # Fast path: last dim already lane-aligned -> pure reshape (metadata).
        cols = orig_shape[-1]
        x2d = x.reshape(-1, cols)
    else:
        flat = x.reshape(-1)
        cols = 512 if n >= 512 else 128
        if n % cols == 0:
            x2d = flat.reshape(-1, cols)            # still no copy of substance
        else:
            rows_needed = pl.cdiv(n, cols)          # pad by < cols elements only
            n_valid = n
            x2d = jnp.pad(flat, (0, rows_needed * cols - n)).reshape(
                rows_needed, cols)

    rows = x2d.shape[0]

    # ---- Row tile: ~block_bytes per block, multiple of 8 sublanes ----------
    br = max(8, (block_bytes // (cols * itemsize)) // 8 * 8)
    if rows < 8:
        br = rows                       # full-extent block (allowed when == dim)
    else:
        br = min(br, (rows // 8) * 8)   # keep block <= array; edge is masked

    n_blocks = pl.cdiv(rows, br)
    # Megacore (v7x has 2 TensorCores): split any non-tiny input into >= 2
    # blocks along the "parallel" grid axis.
    if rows >= 16 and n_blocks < 2:
        half = max(8, pl.cdiv(pl.cdiv(rows, 2), 8) * 8)
        br = min(br, half)
        n_blocks = pl.cdiv(rows, br)

    out2d = pl.pallas_call(
        _gelu_kernel,
        out_shape=jax.ShapeDtypeStruct((rows, cols), orig_dtype),
        grid_spec=pltpu.PrefetchScalarGridSpec(
            num_scalar_prefetch=0,
            grid=(n_blocks,),
            in_specs=[pl.BlockSpec((br, cols), lambda i: (i, 0))],
            out_specs=pl.BlockSpec((br, cols), lambda i: (i, 0)),
        ),
        compiler_params=pltpu.CompilerParams(
            dimension_semantics=("parallel",)),
    )(x2d)

    if n_valid is None:
        return out2d.reshape(orig_shape)
    return out2d.reshape(-1)[:n_valid].reshape(orig_shape)


def _reference(x):
    xf = x.astype(jnp.float32)
    y = 0.5 * xf * (1.0 + jnp.tanh(_SQRT_2_OVER_PI * (xf + 0.044715 * xf ** 3)))
    return y.astype(x.dtype)


if __name__ == "__main__":
    key = jax.random.PRNGKey(0)

    # 1) Small transformer-activation-like shape: batch=2, seq=8, emb=32
    #    (exercises the flat / no-pad path: 512 elems -> one (1, 512) tile).
    x1 = jax.random.normal(key, (2, 8, 32), dtype=jnp.float32)
    out1 = jax.block_until_ready(gelu(x1))
    assert out1.shape == x1.shape
    assert jnp.allclose(out1, _reference(x1), atol=1e-5, rtol=1e-5)

    # 2) Lane-aligned last dim (no-copy fast path, partial last row-block).
    x2 = jax.random.normal(jax.random.PRNGKey(1), (4, 5, 128), dtype=jnp.float32)
    out2 = jax.block_until_ready(gelu(x2))
    assert out2.shape == x2.shape
    assert jnp.allclose(out2, _reference(x2), atol=1e-5, rtol=1e-5)

    # 3) Ragged size (pad path, by < cols elements only).
    x3 = jax.random.normal(jax.random.PRNGKey(2), (5, 7), dtype=jnp.float32)
    out3 = jax.block_until_ready(gelu(x3))
    assert out3.shape == x3.shape
    assert jnp.allclose(out3, _reference(x3), atol=1e-5, rtol=1e-5)

    print("KERNEL_OK")
</pallas_src>

<mosaic_0001>
module attributes {stable_mosaic.version = 11 : i64} {
  func.func @_gelu_kernel(%arg0: i32, %arg1: memref<1x512xf32, #tpu.memory_space<vmem>>, %arg2: memref<1x512xf32, #tpu.memory_space<vmem>>) attributes {dimension_semantics = [#tpu.dimension_semantics<parallel>], iteration_bounds = array<i64: 1>, scalar_prefetch = 0 : i64, scratch_operands = 0 : i64, tpu.core_type = #tpu.core_type<tc>, window_params = [{transform_indices = @transform_0, window_bounds = array<i64: 1, 512>}, {transform_indices = @transform_1, window_bounds = array<i64: 1, 512>}]} {
    %c0 = arith.constant 0 : index
    %c0_0 = arith.constant 0 : index
    %0 = vector.load %arg1[%c0, %c0_0] : memref<1x512xf32, #tpu.memory_space<vmem>>, vector<1x512xf32>
    %1 = arith.mulf %0, %0 : vector<1x512xf32>
    %cst = arith.constant 0.797884583 : f32
    %2 = vector.broadcast %cst : f32 to vector<1x512xf32>
    %3 = arith.mulf %2, %0 : vector<1x512xf32>
    %cst_1 = arith.constant 4.471500e-02 : f32
    %4 = vector.broadcast %cst_1 : f32 to vector<1x512xf32>
    %5 = arith.mulf %4, %1 : vector<1x512xf32>
    %cst_2 = arith.constant 1.000000e+00 : f32
    %6 = vector.broadcast %cst_2 : f32 to vector<1x512xf32>
    %7 = arith.addf %6, %5 : vector<1x512xf32>
    %8 = arith.mulf %3, %7 : vector<1x512xf32>
    %9 = math.tanh %8 : vector<1x512xf32>
    %cst_3 = arith.constant 5.000000e-01 : f32
    %10 = vector.broadcast %cst_3 : f32 to vector<1x512xf32>
    %11 = arith.mulf %10, %9 : vector<1x512xf32>
    %cst_4 = arith.constant 5.000000e-01 : f32
    %12 = vector.broadcast %cst_4 : f32 to vector<1x512xf32>
    %13 = arith.addf %12, %11 : vector<1x512xf32>
    %14 = arith.mulf %0, %13 : vector<1x512xf32>
    %c0_5 = arith.constant 0 : index
    %c0_6 = arith.constant 0 : index
    %15 = vector.load %arg2[%c0_5, %c0_6] : memref<1x512xf32, #tpu.memory_space<vmem>>, vector<1x512xf32>
    tpu.vector_store %arg2[%c0_5, %c0_6], %14 {strides = array<i32>} : memref<1x512xf32, #tpu.memory_space<vmem>>, vector<1x512xf32>,
    return
  }
  func.func @transform_0(%arg0: i32) -> (i32, i32) {
    %c0_i32 = arith.constant 0 : i32
    %c0_i32_0 = arith.constant 0 : i32
    return %arg0, %c0_i32 : i32, i32
  }
  func.func @transform_1(%arg0: i32) -> (i32, i32) {
    %c0_i32 = arith.constant 0 : i32
    %c0_i32_0 = arith.constant 0 : i32
    return %arg0, %c0_i32 : i32, i32
  }
}

</mosaic_0001>

<bundles_post_ra>
// kernel: tpu_custom_call.1
= control target key start
LH: loop header
LB: loop body
LE: loop exit
PB: predicated region body
PF: predicated region fallthrough
CT: control target
= control target key end

     0   :  { %6 = vsyncpa [#allocation3], 0  ;;  %s117_s0 = inlined_call_operand.hbm [shape: f32[1,512], index: 0, kind: input, shape index: {}]   ;;  %s118_s1 = inlined_call_operand.hbm [shape: f32[1,512], index: 1, kind: output, shape index: {}]  }
   0x1   :  { %7 = vsyncpa [#allocation4], 0  ;;  %s99_s6 = smov [#allocation2]  }
   0x2   :  { %s14_s7 = sshll.u32 %s99_s6, 4  ;;  %s15_s7 = int_to_ptr.vmem [resolvable:$true] %s14_s7 }
   0x3   :  { %s63_s8 = scalar_lea.vmem %s15_s7, 64  ;;  %p68_p1 = scmp.lt.s32.totalorder %s15_s7, %s15_s7 }
   0x4   :  { %p64_p0 = scmp.ne.s32.totalorder %s15_s7, %s63_s8  ;;  %p69_p2 = scmp.lt.s32.totalorder %s63_s8, %s63_s8 }
   0x6   :  { %p70_p3 = por %p69_p2, %p68_p1 }
   0x8   :  { %p71_p4 = pnand %p70_p3, %p64_p0 }
   0xa   :  { %74 = shalt.err (!%p71_p4)
}
   0xb   :  { %17 = dma.hbm_to_vmem [thread:$0]  %s117_s0, 64, %s15_s7, [#allocation3]  }
   0xc   :  { %95 = dma.done.wait [#allocation3], 64  }
   0xd   :  { %96 = vsyncadd [#allocation3], 4294967232  ;;  %v21_v0 = vld [vmem:[#allocation2] sm:$0xf]  ;;  %v31_v7 = vlaneseq  ;;  %s100_s11 = smov [#allocation5]  }
   0xe   :  { %v22_v1 = vmul.f32 %v21_v0, %v21_v0  ;;  %v23_v2 = vmul.f32 0.7978846, %v21_v0  ;;  %s42_s12 = sshll.u32 %s100_s11, 4  ;;  %s43_s12 = int_to_ptr.vmem [resolvable:$true] %s42_s12 }
   0xf   :  { %vm33_vm0 = vcmp.lt.s32.totalorder %v31_v7, 512  ;;  %s75_s0 = scalar_lea.vmem %s43_s12, 64  ;;  %p80_p6 = scmp.lt.s32.totalorder %s43_s12, %s43_s12 }
  0x10   :  { %v24_v3 = vmul.f32 0.044715, %v22_v1  ;;  %p76_p5 = scmp.ne.s32.totalorder %s43_s12, %s75_s0  ;;  %p81_p7 = scmp.lt.s32.totalorder %s75_s0, %s75_s0 }
  0x12   :  { %v25_v4 = vadd.f32 1.0, %v24_v3  ;;  %p82_p8 = por %p81_p7, %p80_p6 }
  0x14   :  { %v26_v5 = vmul.f32 %v25_v4, %v23_v2  ;;  %p83_p9 = pnand %p82_p8, %p76_p5 }
  0x16   :  { %53 = vtanh.f32 %v26_v5 }
  0x23   :  { %v54_v6 = vpop.eup %53 }
  0x24   :  { %v28_v8 = vmul.f32 0.5, %v54_v6 }
  0x26   :  { %v29_v9 = vadd.f32 0.5, %v28_v8 }
  0x28   :  { %v30_v10 = vmul.f32 %v29_v9, %v21_v0 }
  0x2a   :  { %35 = vst.msk [vmem:[#allocation5] sm:$0xf] %vm33_vm0, %v30_v10 }
  0x2b   :  { %86 = shalt.err (!%p83_p9)
}
  0x2c   :  { %45 = dma.vmem_to_hbm [thread:$0]  %s43_s12, 64, %s118_s1, [#allocation4]  }
  0x2d   :  { %97 = dma.done.wait [#allocation4], 64  }
  0x2e   :  { %98 = vsyncadd [#allocation4], 4294967232 }
  0x2f   :  { %49 = vsyncpa [#allocation3], 1 }
  0x30   :  { %50 = vsyncpa [#allocation4], 1 }

</bundles_post_ra>
